<compile_context>
chip_gen: v7x
topology: tpu7x:2x2x1
jax: 0.10.0
libtpu: 0.0.40
codegen_flags: <defaults>
</compile_context>

<pallas_src>
import jax
import jax.numpy as jnp
from jax.experimental import pallas as pl
from jax.experimental.pallas import tpu as pltpu

LANES = 128
SUBLANES = 8
MAX_BLOCK_ROWS = 2048   # (2048,128) f32 tile = 1 MiB per input buffer
NUM_CORES = 2           # leading "parallel" grid axis (megacore); no-op on 1 TC
OUT_ROWS = 8            # (8,128)-aligned per-core output block


def _round_up(x, m):
    return ((x + m - 1) // m) * m


def _sublane_mult(dtype):
    """Minimum second-to-last-dim multiple for this dtype's sublane packing."""
    itemsize = jnp.dtype(dtype).itemsize
    return SUBLANES * max(1, 4 // itemsize)   # f32->8, bf16->16, int8/bool->32


def _as_rows(x, mult):
    """Flatten to a lane-aligned (rows, 128) slab, rows a multiple of `mult`.

    Copy-free (pure reshape) whenever numel == rows*128 already; otherwise a
    small zero-pad (zeros contribute nothing to any of the sums).
    """
    n = x.size
    flat = x.reshape(-1)
    rows = max(mult, _round_up(pl.cdiv(n, LANES), mult))
    pad = rows * LANES - n
    if pad:
        flat = jnp.pad(flat, (0, pad))
    return flat.reshape(rows, LANES)


def _make_dice_kernel(block_rows, rows_total, blocks_per_core, clean_blocks,
                      need_mask, has_weights):
    """Build the accumulation kernel with static config baked in via closure."""

    def kernel(*refs):
        if has_weights:
            pred_ref, gt_ref, mask_ref, w_ref, out_ref, acc_i, acc_u = refs
        else:
            pred_ref, gt_ref, mask_ref, out_ref, acc_i, acc_u = refs
            w_ref = None

        c = pl.program_id(0)   # parallel / core axis
        i = pl.program_id(1)   # reduction axis (row-blocks owned by this core)

        @pl.when(i == 0)
        def _():
            acc_i[...] = jnp.zeros_like(acc_i)
            acc_u[...] = jnp.zeros_like(acc_u)

        def accumulate(apply_row_mask):
            p = pred_ref[...].astype(jnp.float32)
            g = gt_ref[...].astype(jnp.float32)
            m = mask_ref[...].astype(jnp.float32)
            if has_weights:
                m = m * w_ref[...].astype(jnp.float32)
            if apply_row_mask:
                # Zero rows past the end of the real data (ragged last block)
                # and the entire duplicated block a core sees when the number
                # of row-blocks does not split evenly (index_map clamps it).
                blk = c * blocks_per_core + i          # unclamped global block
                row_ids = blk * block_rows + jax.lax.broadcasted_iota(
                    jnp.int32, (block_rows, LANES), 0)
                valid = row_ids < rows_total
                zero = jnp.zeros_like(p)
                p = jnp.where(valid, p, zero)
                g = jnp.where(valid, g, zero)
                m = jnp.where(valid, m, zero)
            pm = p * m
            inter = pm * g
            uni = pm + g * m                           # merged union term
            # Fold (block_rows,128) -> (8,128): layout-preserving reshape,
            # leading-axis sum is pure vreg adds (no XLU), accumulators stay
            # a single vreg each.
            acc_i[...] += jnp.sum(inter.reshape(-1, SUBLANES, LANES), axis=0)
            acc_u[...] += jnp.sum(uni.reshape(-1, SUBLANES, LANES), axis=0)

        if need_mask:
            blk = c * blocks_per_core + i
            is_clean = blk < clean_blocks

            @pl.when(is_clean)
            def _():
                accumulate(False)          # hot path: no per-row mask work

            @pl.when(jnp.logical_not(is_clean))
            def _():
                accumulate(True)           # cold path: tail / duplicate block
        else:
            accumulate(False)

        @pl.when(i == pl.num_programs(1) - 1)
        def _():
            s_i = jnp.sum(acc_i[...])
            s_u = jnp.sum(acc_u[...])
            lane = jax.lax.broadcasted_iota(jnp.int32, (OUT_ROWS, LANES), 1)
            out_ref[...] = jnp.where(
                lane == 0, s_i, jnp.where(lane == 1, s_u, 0.0))

    return kernel


def dice_loss(pred, gt, mask, weights=None, eps=1e-6):
    """Forward pass of DiceLoss; semantics identical to the PyTorch module."""
    assert pred.shape == gt.shape
    assert pred.shape == mask.shape
    if weights is not None:
        assert weights.shape == mask.shape

    arrays = [pred, gt, mask] + ([weights] if weights is not None else [])
    mult = max(_sublane_mult(a.dtype) for a in arrays)
    inputs = [_as_rows(a, mult) for a in arrays]

    rows = inputs[0].shape[0]                      # static, multiple of `mult`
    if rows <= MAX_BLOCK_ROWS:
        block_rows = rows                          # full-dim block (always legal)
    else:
        block_rows = (MAX_BLOCK_ROWS // mult) * mult
    num_blocks = pl.cdiv(rows, block_rows)
    blocks_per_core = pl.cdiv(num_blocks, NUM_CORES)
    ragged = (rows % block_rows) != 0
    clean_blocks = num_blocks - 1 if ragged else num_blocks
    need_mask = ragged or (blocks_per_core * NUM_CORES != num_blocks)

    def tile_index(c, i):
        # Clamp so a core handed fewer real blocks re-reads the last valid
        # block instead of running off the array; its contribution is zeroed
        # by the in-kernel (cold-path) row mask.
        return (jnp.minimum(c * blocks_per_core + i, num_blocks - 1), 0)

    tile_spec = pl.BlockSpec((block_rows, LANES), tile_index)
    out_spec = pl.BlockSpec((OUT_ROWS, LANES), lambda c, i: (c, 0))

    kernel = _make_dice_kernel(block_rows, rows, blocks_per_core, clean_blocks,
                               need_mask, weights is not None)

    partials = pl.pallas_call(
        kernel,
        out_shape=jax.ShapeDtypeStruct((NUM_CORES * OUT_ROWS, LANES),
                                       jnp.float32),
        grid_spec=pltpu.PrefetchScalarGridSpec(
            num_scalar_prefetch=0,
            grid=(NUM_CORES, blocks_per_core),
            in_specs=[tile_spec] * len(inputs),
            out_specs=out_spec,
            scratch_shapes=[pltpu.VMEM((OUT_ROWS, LANES), jnp.float32)] * 2,
        ),
        compiler_params=pltpu.CompilerParams(
            dimension_semantics=("parallel", "arbitrary"),
            vmem_limit_bytes=32 * 1024 * 1024),
    )(*inputs)

    # Each core's (8,128) block carries identical rows; take row 0 per core.
    per_core = partials.reshape(NUM_CORES, OUT_ROWS, LANES)[:, 0, :]
    sums = jnp.sum(per_core, axis=0)               # (128,) lane 0/1 hold sums
    intersection = sums[0]
    union = sums[1] + eps
    return 1.0 - 2.0 * intersection / union


def dice_loss_ref(pred, gt, mask, weights=None, eps=1e-6):
    """Pure-JAX reference for validation."""
    if weights is not None:
        mask = weights * mask
    intersection = jnp.sum(pred * gt * mask)
    union = jnp.sum(pred * mask) + jnp.sum(gt * mask) + eps
    return 1.0 - 2.0 * intersection / union


if __name__ == "__main__":
    key = jax.random.PRNGKey(0)
    k1, k2, k3, k4 = jax.random.split(key, 4)

    B, C, H, W = 2, 4, 16, 16  # NCHW, like the PyTorch module's inputs
    pred = jax.nn.sigmoid(jax.random.normal(k1, (B, C, H, W), jnp.float32))
    gt = (jax.random.uniform(k2, (B, C, H, W)) > 0.5).astype(jnp.float32)
    mask = (jax.random.uniform(k3, (B, C, H, W)) > 0.1).astype(jnp.float32)
    weights = jax.random.uniform(k4, (B, C, H, W), jnp.float32)

    loss = jax.jit(dice_loss)(pred, gt, mask, weights)
    jax.block_until_ready(loss)
    ref = dice_loss_ref(pred, gt, mask, weights)
    assert float(loss) <= 1.0, "dice loss must be <= 1"
    assert abs(float(loss) - float(ref)) < 1e-5, (float(loss), float(ref))

    # weights=None path
    loss2 = jax.jit(dice_loss)(pred, gt, mask)
    jax.block_until_ready(loss2)
    ref2 = dice_loss_ref(pred, gt, mask)
    assert abs(float(loss2) - float(ref2)) < 1e-5, (float(loss2), float(ref2))

    # non-lane-aligned shape: exercises padding + masked (cold) tail path
    k5, k6, k7 = jax.random.split(k1, 3)
    shp = (2, 3, 15, 17)
    p3 = jax.nn.sigmoid(jax.random.normal(k5, shp, jnp.float32))
    g3 = (jax.random.uniform(k6, shp) > 0.5).astype(jnp.float32)
    m3 = (jax.random.uniform(k7, shp) > 0.1).astype(jnp.float32)
    loss3 = jax.jit(dice_loss)(p3, g3, m3)
    jax.block_until_ready(loss3)
    ref3 = dice_loss_ref(p3, g3, m3)
    assert abs(float(loss3) - float(ref3)) < 1e-5, (float(loss3), float(ref3))

    print("KERNEL_OK")
</pallas_src>

<mosaic_0001>
module attributes {stable_mosaic.version = 11 : i64} {
  func.func @kernel(%arg0: i32, %arg1: i32, %arg2: memref<16x128xf32, #tpu.memory_space<vmem>>, %arg3: memref<16x128xf32, #tpu.memory_space<vmem>>, %arg4: memref<16x128xf32, #tpu.memory_space<vmem>>, %arg5: memref<16x128xf32, #tpu.memory_space<vmem>>, %arg6: memref<8x128xf32, #tpu.memory_space<vmem>>, %arg7: memref<8x128xf32, #tpu.memory_space<vmem>>, %arg8: memref<8x128xf32, #tpu.memory_space<vmem>>) attributes {dimension_semantics = [#tpu.dimension_semantics<parallel>, #tpu.dimension_semantics<arbitrary>], iteration_bounds = array<i64: 2, 1>, scalar_prefetch = 0 : i64, scratch_operands = 2 : i64, tpu.core_type = #tpu.core_type<tc>, window_params = [{transform_indices = @transform_0, window_bounds = array<i64: 16, 128>}, {transform_indices = @transform_1, window_bounds = array<i64: 16, 128>}, {transform_indices = @transform_2, window_bounds = array<i64: 16, 128>}, {transform_indices = @transform_3, window_bounds = array<i64: 16, 128>}, {transform_indices = @transform_4, window_bounds = array<i64: 8, 128>}]} {
    %c0_i32 = arith.constant 0 : i32
    %0 = arith.cmpi eq, %arg1, %c0_i32 : i32
    %1 = arith.extui %0 : i1 to i32
    %c0_i32_0 = arith.constant 0 : i32
    %2 = arith.cmpi ne, %1, %c0_i32_0 : i32
    scf.if %2 {
      %cst = arith.constant 0.000000e+00 : f32
      %14 = vector.broadcast %cst : f32 to vector<8x128xf32>
      %c0 = arith.constant 0 : index
      %c0_6 = arith.constant 0 : index
      %15 = vector.load %arg7[%c0, %c0_6] : memref<8x128xf32, #tpu.memory_space<vmem>>, vector<8x128xf32>
      tpu.vector_store %arg7[%c0, %c0_6], %14 {strides = array<i32>} : memref<8x128xf32, #tpu.memory_space<vmem>>, vector<8x128xf32>,
      %cst_7 = arith.constant 0.000000e+00 : f32
      %16 = vector.broadcast %cst_7 : f32 to vector<8x128xf32>
      %c0_8 = arith.constant 0 : index
      %c0_9 = arith.constant 0 : index
      %17 = vector.load %arg8[%c0_8, %c0_9] : memref<8x128xf32, #tpu.memory_space<vmem>>, vector<8x128xf32>
      tpu.vector_store %arg8[%c0_8, %c0_9], %16 {strides = array<i32>} : memref<8x128xf32, #tpu.memory_space<vmem>>, vector<8x128xf32>,
    } else {
    }
    %c1_i32 = arith.constant 1 : i32
    %3 = arith.muli %arg0, %c1_i32 : i32
    %4 = arith.addi %3, %arg1 : i32
    %c1_i32_1 = arith.constant 1 : i32
    %5 = arith.cmpi slt, %4, %c1_i32_1 : i32
    %6 = arith.extui %5 : i1 to i32
    %c0_i32_2 = arith.constant 0 : i32
    %7 = arith.cmpi ne, %6, %c0_i32_2 : i32
    scf.if %7 {
      %c0 = arith.constant 0 : index
      %c0_6 = arith.constant 0 : index
      %14 = vector.load %arg2[%c0, %c0_6] : memref<16x128xf32, #tpu.memory_space<vmem>>, vector<16x128xf32>
      %c0_7 = arith.constant 0 : index
      %c0_8 = arith.constant 0 : index
      %15 = vector.load %arg3[%c0_7, %c0_8] : memref<16x128xf32, #tpu.memory_space<vmem>>, vector<16x128xf32>
      %c0_9 = arith.constant 0 : index
      %c0_10 = arith.constant 0 : index
      %16 = vector.load %arg4[%c0_9, %c0_10] : memref<16x128xf32, #tpu.memory_space<vmem>>, vector<16x128xf32>
      %c0_11 = arith.constant 0 : index
      %c0_12 = arith.constant 0 : index
      %17 = vector.load %arg5[%c0_11, %c0_12] : memref<16x128xf32, #tpu.memory_space<vmem>>, vector<16x128xf32>
      %18 = arith.mulf %16, %17 : vector<16x128xf32>
      %19 = arith.mulf %14, %18 : vector<16x128xf32>
      %20 = arith.mulf %19, %15 : vector<16x128xf32>
      %21 = arith.mulf %15, %18 : vector<16x128xf32>
      %22 = arith.addf %19, %21 : vector<16x128xf32>
      %c0_13 = arith.constant 0 : index
      %c0_14 = arith.constant 0 : index
      %23 = vector.load %arg7[%c0_13, %c0_14] : memref<8x128xf32, #tpu.memory_space<vmem>>, vector<8x128xf32>
      %24 = vector.shape_cast %20 : vector<16x128xf32> to vector<2x8x128xf32>
      %cst = arith.constant dense<0.000000e+00> : vector<8x128xf32>
      %25 = vector.multi_reduction <add>, %24, %cst [0] : vector<2x8x128xf32> to vector<8x128xf32>
      %26 = arith.addf %23, %25 : vector<8x128xf32>
      %c0_15 = arith.constant 0 : index
      %c0_16 = arith.constant 0 : index
      %27 = vector.load %arg7[%c0_15, %c0_16] : memref<8x128xf32, #tpu.memory_space<vmem>>, vector<8x128xf32>
      tpu.vector_store %arg7[%c0_15, %c0_16], %26 {strides = array<i32>} : memref<8x128xf32, #tpu.memory_space<vmem>>, vector<8x128xf32>,
      %c0_17 = arith.constant 0 : index
      %c0_18 = arith.constant 0 : index
      %28 = vector.load %arg8[%c0_17, %c0_18] : memref<8x128xf32, #tpu.memory_space<vmem>>, vector<8x128xf32>
      %29 = vector.shape_cast %22 : vector<16x128xf32> to vector<2x8x128xf32>
      %cst_19 = arith.constant dense<0.000000e+00> : vector<8x128xf32>
      %30 = vector.multi_reduction <add>, %29, %cst_19 [0] : vector<2x8x128xf32> to vector<8x128xf32>
      %31 = arith.addf %28, %30 : vector<8x128xf32>
      %c0_20 = arith.constant 0 : index
      %c0_21 = arith.constant 0 : index
      %32 = vector.load %arg8[%c0_20, %c0_21] : memref<8x128xf32, #tpu.memory_space<vmem>>, vector<8x128xf32>
      tpu.vector_store %arg8[%c0_20, %c0_21], %31 {strides = array<i32>} : memref<8x128xf32, #tpu.memory_space<vmem>>, vector<8x128xf32>,
    } else {
    }
    %true = arith.constant true
    %8 = arith.xori %5, %true : i1
    %9 = arith.extui %8 : i1 to i32
    %c0_i32_3 = arith.constant 0 : i32
    %10 = arith.cmpi ne, %9, %c0_i32_3 : i32
    scf.if %10 {
      %c0 = arith.constant 0 : index
      %c0_6 = arith.constant 0 : index
      %14 = vector.load %arg2[%c0, %c0_6] : memref<16x128xf32, #tpu.memory_space<vmem>>, vector<16x128xf32>
      %c0_7 = arith.constant 0 : index
      %c0_8 = arith.constant 0 : index
      %15 = vector.load %arg3[%c0_7, %c0_8] : memref<16x128xf32, #tpu.memory_space<vmem>>, vector<16x128xf32>
      %c0_9 = arith.constant 0 : index
      %c0_10 = arith.constant 0 : index
      %16 = vector.load %arg4[%c0_9, %c0_10] : memref<16x128xf32, #tpu.memory_space<vmem>>, vector<16x128xf32>
      %c0_11 = arith.constant 0 : index
      %c0_12 = arith.constant 0 : index
      %17 = vector.load %arg5[%c0_11, %c0_12] : memref<16x128xf32, #tpu.memory_space<vmem>>, vector<16x128xf32>
      %18 = arith.mulf %16, %17 : vector<16x128xf32>
      %c1_i32_13 = arith.constant 1 : i32
      %19 = arith.muli %arg0, %c1_i32_13 : i32
      %20 = arith.addi %19, %arg1 : i32
      %c16_i32 = arith.constant 16 : i32
      %21 = arith.muli %20, %c16_i32 : i32
      %22 = tpu.iota {dimensions = array<i32: 0>} : vector<16x128xi32>
      %23 = vector.broadcast %21 : i32 to vector<16x128xi32>
      %24 = arith.addi %23, %22 : vector<16x128xi32>
      %c16_i32_14 = arith.constant 16 : i32
      %25 = vector.broadcast %c16_i32_14 : i32 to vector<16x128xi32>
      %26 = arith.cmpi slt, %24, %25 : vector<16x128xi32>
      %cst = arith.constant 0.000000e+00 : f32
      %27 = vector.broadcast %cst : f32 to vector<16x128xf32>
      %28 = arith.select %26, %14, %27 : vector<16x128xi1>, vector<16x128xf32>
      %29 = arith.select %26, %15, %27 : vector<16x128xi1>, vector<16x128xf32>
      %30 = arith.select %26, %18, %27 : vector<16x128xi1>, vector<16x128xf32>
      %31 = arith.mulf %28, %30 : vector<16x128xf32>
      %32 = arith.mulf %31, %29 : vector<16x128xf32>
      %33 = arith.mulf %29, %30 : vector<16x128xf32>
      %34 = arith.addf %31, %33 : vector<16x128xf32>
      %c0_15 = arith.constant 0 : index
      %c0_16 = arith.constant 0 : index
      %35 = vector.load %arg7[%c0_15, %c0_16] : memref<8x128xf32, #tpu.memory_space<vmem>>, vector<8x128xf32>
      %36 = vector.shape_cast %32 : vector<16x128xf32> to vector<2x8x128xf32>
      %cst_17 = arith.constant dense<0.000000e+00> : vector<8x128xf32>
      %37 = vector.multi_reduction <add>, %36, %cst_17 [0] : vector<2x8x128xf32> to vector<8x128xf32>
      %38 = arith.addf %35, %37 : vector<8x128xf32>
      %c0_18 = arith.constant 0 : index
      %c0_19 = arith.constant 0 : index
      %39 = vector.load %arg7[%c0_18, %c0_19] : memref<8x128xf32, #tpu.memory_space<vmem>>, vector<8x128xf32>
      tpu.vector_store %arg7[%c0_18, %c0_19], %38 {strides = array<i32>} : memref<8x128xf32, #tpu.memory_space<vmem>>, vector<8x128xf32>,
      %c0_20 = arith.constant 0 : index
      %c0_21 = arith.constant 0 : index
      %40 = vector.load %arg8[%c0_20, %c0_21] : memref<8x128xf32, #tpu.memory_space<vmem>>, vector<8x128xf32>
      %41 = vector.shape_cast %34 : vector<16x128xf32> to vector<2x8x128xf32>
      %cst_22 = arith.constant dense<0.000000e+00> : vector<8x128xf32>
      %42 = vector.multi_reduction <add>, %41, %cst_22 [0] : vector<2x8x128xf32> to vector<8x128xf32>
      %43 = arith.addf %40, %42 : vector<8x128xf32>
      %c0_23 = arith.constant 0 : index
      %c0_24 = arith.constant 0 : index
      %44 = vector.load %arg8[%c0_23, %c0_24] : memref<8x128xf32, #tpu.memory_space<vmem>>, vector<8x128xf32>
      tpu.vector_store %arg8[%c0_23, %c0_24], %43 {strides = array<i32>} : memref<8x128xf32, #tpu.memory_space<vmem>>, vector<8x128xf32>,
    } else {
    }
    %c0_i32_4 = arith.constant 0 : i32
    %11 = arith.cmpi eq, %arg1, %c0_i32_4 : i32
    %12 = arith.extui %11 : i1 to i32
    %c0_i32_5 = arith.constant 0 : i32
    %13 = arith.cmpi ne, %12, %c0_i32_5 : i32
    scf.if %13 {
      %c0 = arith.constant 0 : index
      %c0_6 = arith.constant 0 : index
      %14 = vector.load %arg7[%c0, %c0_6] : memref<8x128xf32, #tpu.memory_space<vmem>>, vector<8x128xf32>
      %15 = vector.shape_cast %14 : vector<8x128xf32> to vector<1x8x128xf32>
      %cst = arith.constant dense<0.000000e+00> : vector<1xf32>
      %16 = vector.multi_reduction <add>, %15, %cst [1, 2] : vector<1x8x128xf32> to vector<1xf32>
      %17 = vector.shape_cast %16 : vector<1xf32> to vector<1x1x1xf32>
      %18 = vector.extract %17[0, 0, 0] : f32 from vector<1x1x1xf32>
      %c0_7 = arith.constant 0 : index
      %c0_8 = arith.constant 0 : index
      %19 = vector.load %arg8[%c0_7, %c0_8] : memref<8x128xf32, #tpu.memory_space<vmem>>, vector<8x128xf32>
      %20 = vector.shape_cast %19 : vector<8x128xf32> to vector<1x8x128xf32>
      %cst_9 = arith.constant dense<0.000000e+00> : vector<1xf32>
      %21 = vector.multi_reduction <add>, %20, %cst_9 [1, 2] : vector<1x8x128xf32> to vector<1xf32>
      %22 = vector.shape_cast %21 : vector<1xf32> to vector<1x1x1xf32>
      %23 = vector.extract %22[0, 0, 0] : f32 from vector<1x1x1xf32>
      %24 = tpu.iota {dimensions = array<i32: 1>} : vector<8x128xi32>
      %c0_i32_10 = arith.constant 0 : i32
      %25 = vector.broadcast %c0_i32_10 : i32 to vector<8x128xi32>
      %26 = arith.cmpi eq, %24, %25 : vector<8x128xi32>
      %c1_i32_11 = arith.constant 1 : i32
      %27 = vector.broadcast %c1_i32_11 : i32 to vector<8x128xi32>
      %28 = arith.cmpi eq, %24, %27 : vector<8x128xi32>
      %cst_12 = arith.constant 0.000000e+00 : f32
      %29 = vector.broadcast %23 : f32 to vector<8x128xf32>
      %30 = vector.broadcast %cst_12 : f32 to vector<8x128xf32>
      %31 = arith.select %28, %29, %30 : vector<8x128xi1>, vector<8x128xf32>
      %32 = vector.broadcast %18 : f32 to vector<8x128xf32>
      %33 = arith.select %26, %32, %31 : vector<8x128xi1>, vector<8x128xf32>
      %c0_13 = arith.constant 0 : index
      %c0_14 = arith.constant 0 : index
      %34 = vector.load %arg6[%c0_13, %c0_14] : memref<8x128xf32, #tpu.memory_space<vmem>>, vector<8x128xf32>
      tpu.vector_store %arg6[%c0_13, %c0_14], %33 {strides = array<i32>} : memref<8x128xf32, #tpu.memory_space<vmem>>, vector<8x128xf32>,
    } else {
    }
    return
  }
  func.func @transform_0(%arg0: i32, %arg1: i32) -> (i32, i32) {
    %c1_i32 = arith.constant 1 : i32
    %0 = arith.muli %arg0, %c1_i32 : i32
    %1 = arith.addi %0, %arg1 : i32
    %c0_i32 = arith.constant 0 : i32
    %2 = arith.minsi %1, %c0_i32 : i32
    %c0_i32_0 = arith.constant 0 : i32
    %c0_i32_1 = arith.constant 0 : i32
    return %2, %c0_i32_0 : i32, i32
  }
  func.func @transform_1(%arg0: i32, %arg1: i32) -> (i32, i32) {
    %c1_i32 = arith.constant 1 : i32
    %0 = arith.muli %arg0, %c1_i32 : i32
    %1 = arith.addi %0, %arg1 : i32
    %c0_i32 = arith.constant 0 : i32
    %2 = arith.minsi %1, %c0_i32 : i32
    %c0_i32_0 = arith.constant 0 : i32
    %c0_i32_1 = arith.constant 0 : i32
    return %2, %c0_i32_0 : i32, i32
  }
  func.func @transform_2(%arg0: i32, %arg1: i32) -> (i32, i32) {
    %c1_i32 = arith.constant 1 : i32
    %0 = arith.muli %arg0, %c1_i32 : i32
    %1 = arith.addi %0, %arg1 : i32
    %c0_i32 = arith.constant 0 : i32
    %2 = arith.minsi %1, %c0_i32 : i32
    %c0_i32_0 = arith.constant 0 : i32
    %c0_i32_1 = arith.constant 0 : i32
    return %2, %c0_i32_0 : i32, i32
  }
  func.func @transform_3(%arg0: i32, %arg1: i32) -> (i32, i32) {
    %c1_i32 = arith.constant 1 : i32
    %0 = arith.muli %arg0, %c1_i32 : i32
    %1 = arith.addi %0, %arg1 : i32
    %c0_i32 = arith.constant 0 : i32
    %2 = arith.minsi %1, %c0_i32 : i32
    %c0_i32_0 = arith.constant 0 : i32
    %c0_i32_1 = arith.constant 0 : i32
    return %2, %c0_i32_0 : i32, i32
  }
  func.func @transform_4(%arg0: i32, %arg1: i32) -> (i32, i32) {
    %c0_i32 = arith.constant 0 : i32
    %c0_i32_0 = arith.constant 0 : i32
    return %arg0, %c0_i32 : i32, i32
  }
}

</mosaic_0001>

<bundles_post_ra>
// kernel: dice_loss.1
= control target key start
LH: loop header
LB: loop body
LE: loop exit
PB: predicated region body
PF: predicated region fallthrough
CT: control target
= control target key end

     0   :  { %s669_s15 = smov 0   ;;  %s671_s16 = smov 0   ;;  %s750_s0 = inlined_call_operand.vmem [shape: f32[16,128], index: 0, kind: input, shape index: {}]   ;;  %s751_s1 = inlined_call_operand.vmem [shape: f32[16,128], index: 1, kind: input, shape index: {}]   ;;  %s752_s2 = inlined_call_operand.vmem [shape: f32[16,128], index: 2, kind: input, shape index: {}]   ;;  %s753_s3 = inlined_call_operand.vmem [shape: f32[16,128], index: 3, kind: input, shape index: {}]   ;;  %s754_s4 = inlined_call_operand.vmem [shape: f32[16,128], index: 4, kind: output, shape index: {}]  }
   0x1   :  { %s673_s17 = smov 0  }
   0x2 LB: > { %s26_s18 = sadd.s32 1, %s637_s16  ;;  %p575_p0 = scmp.ge.s32.totalorder %s641_s17, 1  ;;  %s641_s17 = sphi %s673_s17, %s14_s17   ;;  %s637_s16 = sphi %s671_s16, %s756_s16   ;;  %s633_s15 = sphi %s669_s15, %s755_s15  }
   0x3   : > { %p28_p1 = scmp.ge.s32.totalorder %s26_s18, 2  ;;  %p256_p2 = scmp.lt.s32.totalorder %s641_s17, 3 }
   0x5   : > { %s758_s18 = smov (%p28_p1, %s26_s18), 0  ;;  %p257_p3 = pnand %p575_p0, %p256_p2 }
   0x6   : > { %p309_p4 = scmp.lt.s32.totalorder (!%p257_p3), %s633_s15, 0  ;;  %p356_p5 = scmp.lt.s32.totalorder (!%p257_p3), %s633_s15, 1  ;;  %v643_v0 = vmov (!%p257_p3), 0.0  }
   0x7   : > { %260 = sbr.rel (%p257_p3) target bundleno = 275 (0x113), region = 36  ;;  %364 = vst [vmem:[#allocation2] sm:$0xff] (!%p257_p3), %v643_v0  ;;  %365 = vst [vmem:[#allocation3] sm:$0xff] (!%p257_p3), %v643_v0  ;;  %p585_p7 = scmp.ge.s32.totalorder (!%p257_p3), %s633_s15, 1 }
   0xe   : > { %s310_s19 = scalar_select %p309_p4, %s633_s15, 0 }
   0xf   : > { %s357_s20 = scalar_select %p356_p5, %s633_s15, 1 }
  0x10   : > { %s576_s21 = sshll.u32 %s310_s19, 1  ;;  %370 = sbr.rel (%p585_p7) target bundleno = 37 (0x25), region = 44  ;;  %v389_v19 = vld [vmem:[#allocation2] sm:$0xff] (!%p585_p7)  ;;  %v393_v20 = vld [vmem:[#allocation3] sm:$0xff] (!%p585_p7) }
  0x11   : > { %p312_p6 = scmp.lt.s32.totalorder %s576_s21, 1  ;;  %s584_s22 = sshll.u32 %s357_s20, 3 }
  0x12   : > { %s698_s25 = scalar_lea.vmem %s754_s4, %s584_s22 }
  0x13   : > { %s760_s21 = smov (!%p312_p6, %s576_s21), 1 }
  0x14   : > { %s577_s26 = sshll.u32 %s760_s21, 3 }
  0x15   : > { %s703_s29 = scalar_lea.vmem %s750_s0, %s577_s26  ;;  %s708_s6 = scalar_lea.vmem %s751_s1, %s577_s26 }
  0x16   : > { %s713_s9 = scalar_lea.vmem %s752_s2, %s577_s26  ;;  %s718_s12 = scalar_lea.vmem %s753_s3, %s577_s26  ;;  %v371_v1 = vld [vmem:[%s703_s29] sm:$0xff] (!%p585_p7)  ;;  %v372_v2 = vld [vmem:[%s703_s29 + $0x8] sm:$0xff] (!%p585_p7) }
  0x17   : > { %v373_v3 = vld [vmem:[%s708_s6] sm:$0xff]  ;;  %v376_v5 = vld [vmem:[%s713_s9 + $0x8] sm:$0xff] }
  0x18   : > { %v375_v4 = vld [vmem:[%s713_s9] sm:$0xff]  ;;  %v374_v6 = vld [vmem:[%s708_s6 + $0x8] sm:$0xff] }
  0x19   : > { %v377_v7 = vld [vmem:[%s718_s12] sm:$0xff]  ;;  %v378_v8 = vld [vmem:[%s718_s12 + $0x8] sm:$0xff] }
  0x1a   : > { %v379_v9 = vmul.f32 %v377_v7, %v375_v4  ;;  %v380_v10 = vmul.f32 %v378_v8, %v376_v5 }
  0x1c   : > { %v381_v11 = vmul.f32 %v379_v9, %v371_v1  ;;  %v382_v12 = vmul.f32 %v380_v10, %v372_v2  ;;  %v385_v13 = vmul.f32 %v379_v9, %v373_v3  ;;  %v386_v14 = vmul.f32 %v380_v10, %v374_v6 }
  0x1e   : > { %v383_v15 = vmul.f32 %v381_v11, %v373_v3  ;;  %v384_v16 = vmul.f32 %v382_v12, %v374_v6  ;;  %v387_v17 = vadd.f32 %v385_v13, %v381_v11  ;;  %v388_v18 = vadd.f32 %v386_v14, %v382_v12 }
  0x20   : > { %v390_v21 = vadd.f32 %v384_v16, %v383_v15  ;;  %v394_v22 = vadd.f32 %v388_v18, %v387_v17 }
  0x22   : > { %v391_v23 = vadd.f32 %v390_v21, %v389_v19  ;;  %v395_v24 = vadd.f32 %v394_v22, %v393_v20 }
  0x24   : > { %392 = vst [vmem:[#allocation2] sm:$0xff] %v391_v23  ;;  %396 = vst [vmem:[#allocation3] sm:$0xff] %v395_v24 }
  0x25 PF: > { %400 = sbr.rel (%p356_p5) target bundleno = 56 (0x38), region = 48  ;;  %s587_s13 = sshll.u32 (!%p356_p5), %s633_s15, 4  ;;  %v412_v25 = vlaneseq (!%p356_p5)  ;;  %v405_v26 = vld [vmem:[%s713_s9] sm:$0xff] (!%p356_p5)  ;;  %v406_v28 = vld [vmem:[%s713_s9 + $0x8] sm:$0xff] (!%p356_p5) }
  0x26   : > { %v415_v27 = vstv (!%p356_p5), %s587_s13  ;;  %v407_v29 = vld [vmem:[%s718_s12] sm:$0xff] (!%p356_p5)  ;;  %v408_v30 = vld [vmem:[%s718_s12 + $0x8] sm:$0xff] (!%p356_p5) }
  0x27   : > { %v413_v31 = vshrl.u32 (!%p356_p5), %v412_v25, 7  ;;  %v409_v32 = vmul.f32 (!%p356_p5), %v407_v29, %v405_v26  ;;  %v401_v33 = vld [vmem:[%s703_s29] sm:$0xff] (!%p356_p5)  ;;  %v410_v37 = vmul.f32 (!%p356_p5), %v408_v30, %v406_v28  ;;  %v402_v38 = vld [vmem:[%s703_s29 + $0x8] sm:$0xff] (!%p356_p5) }
  0x28   : > { %v403_v34 = vld [vmem:[%s708_s6] sm:$0xff] (!%p356_p5)  ;;  %v404_v39 = vld [vmem:[%s708_s6 + $0x8] sm:$0xff] (!%p356_p5) }
  0x29   : > { %v414_v35 = vadd.s32 (!%p356_p5), 8, %v413_v31  ;;  %v416_v36 = vadd.s32 (!%p356_p5), %v415_v27, %v413_v31 }
  0x2b   : > { %v417_v40 = vadd.s32 (!%p356_p5), %v415_v27, %v414_v35  ;;  %vm418_vm0 = vcmp.lt.s32.totalorder (!%p356_p5), %v416_v36, 16  ;;  %v434_v55 = vld [vmem:[#allocation2] sm:$0xff] (!%p356_p5)  ;;  %v438_v56 = vld [vmem:[#allocation3] sm:$0xff] (!%p356_p5) }
  0x2c   : > { %v420_v41 = vsel %vm418_vm0, %v401_v33, 0.0  ;;  %v422_v42 = vsel %vm418_vm0, %v403_v34, 0.0  ;;  %v424_v43 = vsel %vm418_vm0, %v409_v32, 0.0 }
  0x2d   : > { %vm419_vm1 = vcmp.lt.s32.totalorder %v417_v40, 16  ;;  %v426_v44 = vmul.f32 %v424_v43, %v420_v41  ;;  %v430_v45 = vmul.f32 %v424_v43, %v422_v42 }
  0x2e   : > { %v421_v46 = vsel %vm419_vm1, %v402_v38, 0.0  ;;  %v423_v47 = vsel %vm419_vm1, %v404_v39, 0.0  ;;  %v425_v48 = vsel %vm419_vm1, %v410_v37, 0.0 }
  0x2f   : > { %v427_v49 = vmul.f32 %v425_v48, %v421_v46  ;;  %v428_v50 = vmul.f32 %v426_v44, %v422_v42  ;;  %v431_v51 = vmul.f32 %v425_v48, %v423_v47  ;;  %v432_v52 = vadd.f32 %v430_v45, %v426_v44 }
  0x31   : > { %v429_v53 = vmul.f32 %v427_v49, %v423_v47  ;;  %v433_v54 = vadd.f32 %v431_v51, %v427_v49 }
  0x33   : > { %v435_v57 = vadd.f32 %v429_v53, %v428_v50  ;;  %v439_v58 = vadd.f32 %v433_v54, %v432_v52 }
  0x35   : > { %v436_v59 = vadd.f32 %v435_v57, %v434_v55  ;;  %v440_v60 = vadd.f32 %v439_v58, %v438_v56 }
  0x37   : > { %437 = vst [vmem:[#allocation2] sm:$0xff] %v436_v59  ;;  %441 = vst [vmem:[#allocation3] sm:$0xff] %v440_v60 }
  0x38 PF: > { %v465_v13 = vlaneseq }
  0x3a   : > { %v466_v14 = vand.u32 127, %v465_v13 }
  0x3c   : > { %vm468_vm2 = vcmp.eq.s32.totalorder %v466_v14, 1  ;;  %vm467_vm3 = vcmp.eq.s32.totalorder %v466_v14, 0 }
  0x3e   : > { %v445_v61 = vld [vmem:[#allocation2] sm:$0xff]  ;;  %v455_v62 = vld [vmem:[#allocation3] sm:$0xff] }
  0x3f   : > { %446 = vadd.xlane.f32.xlu0 %v445_v61 }
  0x43   : > { %456 = vadd.xlane.f32.xlu0 %v455_v62 }
  0xcc   : > { %v447_v63 = vpop.xlane.xlu0 %446 }
  0xcd   : > { %v448_v0 = vrot.slane %v447_v63, 4 }
  0xcf   : > { %v449_v1 = vadd.f32 %v448_v0, %v447_v63 }
  0xd0   : > { %v457_v2 = vpop.xlane.xlu0 %456 }
  0xd1   : > { %v450_v3 = vrot.slane %v449_v1, 2  ;;  %v458_v4 = vrot.slane %v457_v2, 4 }
  0xd3   : > { %v459_v5 = vadd.f32 %v458_v4, %v457_v2  ;;  %v451_v6 = vadd.f32 %v450_v3, %v449_v1 }
  0xd5   : > { %v460_v7 = vrot.slane %v459_v5, 2  ;;  %v452_v8 = vrot.slane %v451_v6, 1 }
  0xd7   : > { %v461_v9 = vadd.f32 %v460_v7, %v459_v5  ;;  %v453_v10 = vadd.f32 %v452_v8, %v451_v6 }
  0xd9   : > { %590 = vpush %v453_v10  ;;  %v462_v11 = vrot.slane %v461_v9, 1 }
  0xdb   : > { %v463_v12 = vadd.f32 %v462_v11, %v461_v9 }
  0xdd   : > { %592 = vpush %v463_v12 }
 0x10a   : > { %s591_s14 = spop %590 }
 0x10b   : > { %v471_v16 = vstv %s591_s14 }
 0x10e   : > { %s593_s15 = spop %592 }
 0x10f   : > { %v469_v15 = vstv %s593_s15 }
 0x110   : > { %v470_v17 = vsel %vm468_vm2, %v469_v15, 0.0 }
 0x111   : > { %v472_v18 = vsel %vm467_vm3, %v471_v16, %v470_v17 }
 0x112   : > { %473 = vst [vmem:[%s698_s25] sm:$0xff] %v472_v18 }
 0x113 PF: > { %s14_s17 = sadd.s32 1, %s641_s17   ;;  %s755_s15 = smov %s637_s16 }
 0x114   : > { %p11_p8 = scmp.ge.s32.totalorder %s14_s17, 4   ;;  %s756_s16 = smov %s758_s18 }
 0x116   :  { %13 = sbr.rel (!%p11_p8) target bundleno = 2 (0x2), region = 91 }

</bundles_post_ra>
